<compile_context>
chip_gen: v7x
topology: tpu7x:2x2x1
jax: 0.10.0
libtpu: 0.0.40
codegen_flags: <defaults>
</compile_context>

<pallas_src>
import jax
import jax.numpy as jnp
from jax.experimental import pallas as pl
from jax.experimental.pallas import tpu as pltpu


def critic_kernel(x_ref,
                  w1_ref, b1_ref,      # block-diag(wo1, wa1), concat(bo1, ba1)
                  w2_ref, b2_ref,      # block-diag(wo2, wa2), concat(bo2, ba2)
                  wl1_ref, bl1_ref,    # `last` MLP hidden layer
                  wl2_ref, bl2_ref,    # final Linear(HID -> 1), wl2 as (1, HID)
                  q_ref):
    f32 = jnp.float32

    x = x_ref[...]
    # Fused obs/act preprocess layer 1 (block-diagonal weights).
    h = jnp.maximum(
        jnp.dot(x, w1_ref[...], preferred_element_type=f32) + b1_ref[...], 0.0)
    h = h.astype(w2_ref.dtype)

    # Fused preprocess layer 2 -> yields [s_feat | a_feat] on the lane axis
    # (the torch.cat is implicit in the block-diagonal structure).
    feat = jnp.maximum(
        jnp.dot(h, w2_ref[...], preferred_element_type=f32) + b2_ref[...], 0.0)
    feat = feat.astype(wl1_ref.dtype)

    # `last` MLP hidden layer (consumes the concatenated features directly).
    hl = jnp.maximum(
        jnp.dot(feat, wl1_ref[...], preferred_element_type=f32) + bl1_ref[...], 0.0)

    # Final Linear(HID -> 1): VPU multiply + XLU lane reduce instead of an
    # N=1 MXU matmul (avoids paying full MXU push/drain for one column).
    q_ref[...] = (jnp.sum(hl * wl2_ref[...].astype(f32), axis=-1, keepdims=True)
                  + bl2_ref[...].astype(f32))


def _round_up(x, m):
    return ((x + m - 1) // m) * m


def _block_diag(a, b):
    fa_in, fa_out = a.shape
    fb_in, fb_out = b.shape
    top = jnp.concatenate([a, jnp.zeros((fa_in, fb_out), a.dtype)], axis=1)
    bot = jnp.concatenate([jnp.zeros((fb_in, fa_out), b.dtype), b], axis=1)
    return jnp.concatenate([top, bot], axis=0)


def pack_critic_params(raw_params, compute_dtype=jnp.float32):
    """Pack PyTorch-style per-layer params into the fused kernel layout.

    Weights may be stored in bf16 (compute_dtype) for v6e/v7x; biases and the
    final (1, HID) weight row stay f32 since they feed f32 VPU work.
    """
    (wo1, bo1, wo2, bo2, wa1, ba1, wa2, ba2, wl1, bl1, wl2, bl2) = raw_params
    w1 = _block_diag(wo1, wa1).astype(compute_dtype)
    b1 = jnp.concatenate([bo1, ba1], axis=1).astype(jnp.float32)
    w2 = _block_diag(wo2, wa2).astype(compute_dtype)
    b2 = jnp.concatenate([bo2, ba2], axis=1).astype(jnp.float32)
    wl1_p = wl1.astype(compute_dtype)
    bl1_p = bl1.astype(jnp.float32)
    wl2_row = wl2.T.astype(jnp.float32)   # (1, HID) for the VPU reduce
    bl2_p = bl2.astype(jnp.float32)       # (1, 1)
    return (w1, b1, w2, b2, wl1_p, bl1_p, wl2_row, bl2_p)


def critic_forward(s, a, packed_params, *, block_batch=512):
    """Q(s, a) via a single fused Pallas call with a batch grid."""
    (w1, b1, w2, b2, wl1, bl1, wl2_row, bl2) = packed_params
    compute_dtype = w1.dtype

    B = s.shape[0]
    x = jnp.concatenate([s, a], axis=1).astype(compute_dtype)
    in_dim = x.shape[1]

    # Batch tile: as large as sensible (measured tile curve: 512 rows ~ 85% of
    # roofline), rounded to the sublane quantum (8), capped by the batch.
    TB = min(block_batch, _round_up(B, 8))
    Bp = _round_up(B, TB)
    if Bp != B:
        # Zero-pad the ragged tail so the last grid block reads valid rows.
        x = jnp.pad(x, ((0, Bp - B), (0, 0)))

    grid = (pl.cdiv(Bp, TB),)

    x_spec = pl.BlockSpec((TB, in_dim), lambda i: (i, 0))
    # Weights/biases: full-array blocks with a constant index_map -> loaded
    # once, VMEM-resident across all batch tiles.
    weight_specs = [pl.BlockSpec(p.shape, lambda i: (0, 0)) for p in packed_params]
    out_spec = pl.BlockSpec((TB, 1), lambda i: (i, 0))

    # Explicit VMEM budget (resident weights + double-buffered x/q blocks +
    # live activation slabs, 2x margin), capped well under v7x's 64 MiB.
    weight_bytes = sum(int(p.size) * p.dtype.itemsize for p in packed_params)
    widest = max(in_dim, w1.shape[1], w2.shape[1], wl1.shape[1])
    io_bytes = 2 * TB * (in_dim * x.dtype.itemsize + 4)
    act_bytes = 4 * TB * widest * 4
    vmem_limit = int(min(max(2 * (weight_bytes + io_bytes + act_bytes), 8 << 20),
                         48 << 20))

    q = pl.pallas_call(
        critic_kernel,
        out_shape=jax.ShapeDtypeStruct((Bp, 1), jnp.float32),
        grid=grid,
        in_specs=[x_spec] + weight_specs,
        out_specs=out_spec,
        compiler_params=pltpu.CompilerParams(
            dimension_semantics=("parallel",),   # shards batch over v7x's 2 TCs
            vmem_limit_bytes=vmem_limit),
    )(x, *packed_params)

    return q[:B] if Bp != B else q


def critic_forward_ref(s, a, raw_params):
    (wo1, bo1, wo2, bo2, wa1, ba1, wa2, ba2, wl1, bl1, wl2, bl2) = raw_params
    s_feat = jnp.maximum(jnp.maximum(s @ wo1 + bo1, 0.0) @ wo2 + bo2, 0.0)
    a_feat = jnp.maximum(jnp.maximum(a @ wa1 + ba1, 0.0) @ wa2 + ba2, 0.0)
    logits = jnp.concatenate([s_feat, a_feat], axis=1)
    h = jnp.maximum(logits @ wl1 + bl1, 0.0)
    return h @ wl2 + bl2


def _linear_init(key, fan_in, fan_out):
    # Deterministic PyTorch-style uniform(-1/sqrt(fan_in), 1/sqrt(fan_in)) init.
    kw, kb = jax.random.split(key)
    bound = 1.0 / jnp.sqrt(jnp.float32(fan_in))
    w = jax.random.uniform(kw, (fan_in, fan_out), jnp.float32, -bound, bound)
    b = jax.random.uniform(kb, (1, fan_out), jnp.float32, -bound, bound)
    return w, b


if __name__ == "__main__":
    # Small, module-consistent shapes.
    # TODO(synk): real deployments should pick hidden widths that are
    # multiples of 128 (lane-aligned) for best MXU/store utilization.
    B = 8            # batch
    OBS_DIM = 16     # raw observation features
    ACT_DIM = 8      # raw action features
    OBS_FEAT = 32    # obs_preprocess_net_output_dim
    ACT_FEAT = 32    # act_preprocess_net_output_dim
    HID_PRE = 32     # preprocess-net hidden width
    HID_LAST = 32    # hidden_sizes = [32] for the `last` MLP

    key = jax.random.PRNGKey(0)
    keys = jax.random.split(key, 10)

    # obs preprocess (OBS_DIM -> HID_PRE -> OBS_FEAT), act preprocess likewise.
    wo1, bo1 = _linear_init(keys[0], OBS_DIM, HID_PRE)
    wo2, bo2 = _linear_init(keys[1], HID_PRE, OBS_FEAT)
    wa1, ba1 = _linear_init(keys[2], ACT_DIM, HID_PRE)
    wa2, ba2 = _linear_init(keys[3], HID_PRE, ACT_FEAT)
    # last MLP ((OBS_FEAT + ACT_FEAT) -> HID_LAST -> 1)
    wl1, bl1 = _linear_init(keys[4], OBS_FEAT + ACT_FEAT, HID_LAST)
    wl2, bl2 = _linear_init(keys[5], HID_LAST, 1)

    raw = (wo1, bo1, wo2, bo2, wa1, ba1, wa2, ba2, wl1, bl1, wl2, bl2)

    s = jax.random.normal(keys[6], (B, OBS_DIM), jnp.float32)
    a = jax.random.normal(keys[7], (B, ACT_DIM), jnp.float32)
    q_ref = critic_forward_ref(s, a, raw)

    # f32 path — exact vs reference.
    packed_f32 = pack_critic_params(raw, jnp.float32)
    q = jax.block_until_ready(critic_forward(s, a, packed_f32))
    assert q.shape == (B, 1)
    assert jnp.allclose(q, q_ref, atol=1e-5, rtol=1e-5)

    # Ragged batch — exercises the zero-padded tail block of the batch grid.
    B2 = 10
    s2 = jax.random.normal(keys[8], (B2, OBS_DIM), jnp.float32)
    a2 = jax.random.normal(keys[9], (B2, ACT_DIM), jnp.float32)
    q2 = jax.block_until_ready(critic_forward(s2, a2, packed_f32))
    assert q2.shape == (B2, 1)
    assert jnp.allclose(q2, critic_forward_ref(s2, a2, raw), atol=1e-5, rtol=1e-5)

    # bf16 weights/activations (v6e/v7x fast path; f32 accumulation inside).
    packed_bf16 = pack_critic_params(raw, jnp.bfloat16)
    q_bf16 = jax.block_until_ready(critic_forward(s, a, packed_bf16))
    assert q_bf16.shape == (B, 1)
    assert jnp.allclose(q_bf16, q_ref, atol=1e-1, rtol=1e-1)

    print("KERNEL_OK")
</pallas_src>

<mosaic_0001>
module attributes {stable_mosaic.version = 11 : i64} {
  func.func @critic_kernel(%arg0: i32, %arg1: memref<8x24xf32, #tpu.memory_space<vmem>>, %arg2: memref<24x64xf32, #tpu.memory_space<vmem>>, %arg3: memref<1x64xf32, #tpu.memory_space<vmem>>, %arg4: memref<64x64xf32, #tpu.memory_space<vmem>>, %arg5: memref<1x64xf32, #tpu.memory_space<vmem>>, %arg6: memref<64x32xf32, #tpu.memory_space<vmem>>, %arg7: memref<1x32xf32, #tpu.memory_space<vmem>>, %arg8: memref<1x32xf32, #tpu.memory_space<vmem>>, %arg9: memref<1x1xf32, #tpu.memory_space<vmem>>, %arg10: memref<8x1xf32, #tpu.memory_space<vmem>>) attributes {dimension_semantics = [#tpu.dimension_semantics<parallel>], iteration_bounds = array<i64: 1>, scalar_prefetch = 0 : i64, scratch_operands = 0 : i64, tpu.core_type = #tpu.core_type<tc>, window_params = [{transform_indices = @transform_0, window_bounds = array<i64: 8, 24>}, {pipeline_mode = #tpu.pipeline_mode<synchronous>, transform_indices = @transform_1, window_bounds = array<i64: 24, 64>}, {pipeline_mode = #tpu.pipeline_mode<synchronous>, transform_indices = @transform_2, window_bounds = array<i64: 1, 64>}, {pipeline_mode = #tpu.pipeline_mode<synchronous>, transform_indices = @transform_3, window_bounds = array<i64: 64, 64>}, {pipeline_mode = #tpu.pipeline_mode<synchronous>, transform_indices = @transform_4, window_bounds = array<i64: 1, 64>}, {pipeline_mode = #tpu.pipeline_mode<synchronous>, transform_indices = @transform_5, window_bounds = array<i64: 64, 32>}, {pipeline_mode = #tpu.pipeline_mode<synchronous>, transform_indices = @transform_6, window_bounds = array<i64: 1, 32>}, {pipeline_mode = #tpu.pipeline_mode<synchronous>, transform_indices = @transform_7, window_bounds = array<i64: 1, 32>}, {pipeline_mode = #tpu.pipeline_mode<synchronous>, transform_indices = @transform_8, window_bounds = array<i64: 1, 1>}, {transform_indices = @transform_9, window_bounds = array<i64: 8, 1>}]} {
    %c0 = arith.constant 0 : index
    %c0_0 = arith.constant 0 : index
    %0 = vector.load %arg1[%c0, %c0_0] : memref<8x24xf32, #tpu.memory_space<vmem>>, vector<8x24xf32>
    %c0_1 = arith.constant 0 : index
    %c0_2 = arith.constant 0 : index
    %1 = vector.load %arg2[%c0_1, %c0_2] : memref<24x64xf32, #tpu.memory_space<vmem>>, vector<24x64xf32>
    %cst = arith.constant dense<0.000000e+00> : vector<8x64xf32>
    %2 = tpu.matmul %0, %1, %cst {dimension_numbers = #tpu.dot_dimension_numbers<[1], [0], [0], [1], [0, 0, 1, 1], [], []>} : vector<8x24xf32>, vector<24x64xf32>, vector<8x64xf32> -> vector<8x64xf32>
    %c0_3 = arith.constant 0 : index
    %c0_4 = arith.constant 0 : index
    %3 = vector.load %arg3[%c0_3, %c0_4] : memref<1x64xf32, #tpu.memory_space<vmem>>, vector<1x64xf32>
    %4 = vector.broadcast %3 : vector<1x64xf32> to vector<8x64xf32>
    %5 = arith.addf %2, %4 : vector<8x64xf32>
    %cst_5 = arith.constant 0.000000e+00 : f32
    %6 = vector.broadcast %cst_5 : f32 to vector<8x64xf32>
    %7 = arith.maximumf %5, %6 : vector<8x64xf32>
    %c0_6 = arith.constant 0 : index
    %c0_7 = arith.constant 0 : index
    %8 = vector.load %arg4[%c0_6, %c0_7] : memref<64x64xf32, #tpu.memory_space<vmem>>, vector<64x64xf32>
    %cst_8 = arith.constant dense<0.000000e+00> : vector<8x64xf32>
    %9 = tpu.matmul %7, %8, %cst_8 {dimension_numbers = #tpu.dot_dimension_numbers<[1], [0], [0], [1], [0, 0, 1, 1], [], []>} : vector<8x64xf32>, vector<64x64xf32>, vector<8x64xf32> -> vector<8x64xf32>
    %c0_9 = arith.constant 0 : index
    %c0_10 = arith.constant 0 : index
    %10 = vector.load %arg5[%c0_9, %c0_10] : memref<1x64xf32, #tpu.memory_space<vmem>>, vector<1x64xf32>
    %11 = vector.broadcast %10 : vector<1x64xf32> to vector<8x64xf32>
    %12 = arith.addf %9, %11 : vector<8x64xf32>
    %cst_11 = arith.constant 0.000000e+00 : f32
    %13 = vector.broadcast %cst_11 : f32 to vector<8x64xf32>
    %14 = arith.maximumf %12, %13 : vector<8x64xf32>
    %c0_12 = arith.constant 0 : index
    %c0_13 = arith.constant 0 : index
    %15 = vector.load %arg6[%c0_12, %c0_13] : memref<64x32xf32, #tpu.memory_space<vmem>>, vector<64x32xf32>
    %cst_14 = arith.constant dense<0.000000e+00> : vector<8x32xf32>
    %16 = tpu.matmul %14, %15, %cst_14 {dimension_numbers = #tpu.dot_dimension_numbers<[1], [0], [0], [1], [0, 0, 1, 1], [], []>} : vector<8x64xf32>, vector<64x32xf32>, vector<8x32xf32> -> vector<8x32xf32>
    %c0_15 = arith.constant 0 : index
    %c0_16 = arith.constant 0 : index
    %17 = vector.load %arg7[%c0_15, %c0_16] : memref<1x32xf32, #tpu.memory_space<vmem>>, vector<1x32xf32>
    %18 = vector.broadcast %17 : vector<1x32xf32> to vector<8x32xf32>
    %19 = arith.addf %16, %18 : vector<8x32xf32>
    %cst_17 = arith.constant 0.000000e+00 : f32
    %20 = vector.broadcast %cst_17 : f32 to vector<8x32xf32>
    %21 = arith.maximumf %19, %20 : vector<8x32xf32>
    %c0_18 = arith.constant 0 : index
    %c0_19 = arith.constant 0 : index
    %22 = vector.load %arg8[%c0_18, %c0_19] : memref<1x32xf32, #tpu.memory_space<vmem>>, vector<1x32xf32>
    %23 = vector.broadcast %22 : vector<1x32xf32> to vector<8x32xf32>
    %24 = arith.mulf %21, %23 : vector<8x32xf32>
    %cst_20 = arith.constant dense<0.000000e+00> : vector<8xf32>
    %25 = vector.multi_reduction <add>, %24, %cst_20 [1] : vector<8x32xf32> to vector<8xf32>
    %26 = vector.shape_cast %25 : vector<8xf32> to vector<8x1xf32>
    %c0_21 = arith.constant 0 : index
    %c0_22 = arith.constant 0 : index
    %27 = vector.load %arg9[%c0_21, %c0_22] : memref<1x1xf32, #tpu.memory_space<vmem>>, vector<1x1xf32>
    %28 = vector.broadcast %27 : vector<1x1xf32> to vector<8x1xf32>
    %29 = arith.addf %26, %28 : vector<8x1xf32>
    %c0_23 = arith.constant 0 : index
    %c0_24 = arith.constant 0 : index
    %30 = vector.load %arg10[%c0_23, %c0_24] : memref<8x1xf32, #tpu.memory_space<vmem>>, vector<8x1xf32>
    tpu.vector_store %arg10[%c0_23, %c0_24], %29 {strides = array<i32>} : memref<8x1xf32, #tpu.memory_space<vmem>>, vector<8x1xf32>,
    return
  }
  func.func @transform_0(%arg0: i32) -> (i32, i32) {
    %c0_i32 = arith.constant 0 : i32
    %c0_i32_0 = arith.constant 0 : i32
    return %arg0, %c0_i32 : i32, i32
  }
  func.func @transform_1(%arg0: i32) -> (i32, i32) {
    %c0_i32 = arith.constant 0 : i32
    %c0_i32_0 = arith.constant 0 : i32
    %c0_i32_1 = arith.constant 0 : i32
    return %c0_i32, %c0_i32_0 : i32, i32
  }
  func.func @transform_2(%arg0: i32) -> (i32, i32) {
    %c0_i32 = arith.constant 0 : i32
    %c0_i32_0 = arith.constant 0 : i32
    %c0_i32_1 = arith.constant 0 : i32
    return %c0_i32, %c0_i32_0 : i32, i32
  }
  func.func @transform_3(%arg0: i32) -> (i32, i32) {
    %c0_i32 = arith.constant 0 : i32
    %c0_i32_0 = arith.constant 0 : i32
    %c0_i32_1 = arith.constant 0 : i32
    return %c0_i32, %c0_i32_0 : i32, i32
  }
  func.func @transform_4(%arg0: i32) -> (i32, i32) {
    %c0_i32 = arith.constant 0 : i32
    %c0_i32_0 = arith.constant 0 : i32
    %c0_i32_1 = arith.constant 0 : i32
    return %c0_i32, %c0_i32_0 : i32, i32
  }
  func.func @transform_5(%arg0: i32) -> (i32, i32) {
    %c0_i32 = arith.constant 0 : i32
    %c0_i32_0 = arith.constant 0 : i32
    %c0_i32_1 = arith.constant 0 : i32
    return %c0_i32, %c0_i32_0 : i32, i32
  }
  func.func @transform_6(%arg0: i32) -> (i32, i32) {
    %c0_i32 = arith.constant 0 : i32
    %c0_i32_0 = arith.constant 0 : i32
    %c0_i32_1 = arith.constant 0 : i32
    return %c0_i32, %c0_i32_0 : i32, i32
  }
  func.func @transform_7(%arg0: i32) -> (i32, i32) {
    %c0_i32 = arith.constant 0 : i32
    %c0_i32_0 = arith.constant 0 : i32
    %c0_i32_1 = arith.constant 0 : i32
    return %c0_i32, %c0_i32_0 : i32, i32
  }
  func.func @transform_8(%arg0: i32) -> (i32, i32) {
    %c0_i32 = arith.constant 0 : i32
    %c0_i32_0 = arith.constant 0 : i32
    %c0_i32_1 = arith.constant 0 : i32
    return %c0_i32, %c0_i32_0 : i32, i32
  }
  func.func @transform_9(%arg0: i32) -> (i32, i32) {
    %c0_i32 = arith.constant 0 : i32
    %c0_i32_0 = arith.constant 0 : i32
    return %arg0, %c0_i32 : i32, i32
  }
}

</mosaic_0001>

<bundles_post_ra>
// kernel: tpu_custom_call.1
= control target key start
LH: loop header
LB: loop body
LE: loop exit
PB: predicated region body
PF: predicated region fallthrough
CT: control target
= control target key end

     0   :  { %v432_v0 = vmov 0.0|0.0   ;;  %vm433_vm0 = vmmov 0   ;;  %v434_v3 = vmov 0.0   ;;  %vm45_vm1 = vcmask 195584   ;;  %s566_s1 = inlined_call_operand.vmem [shape: f32[24,64], index: 1, kind: input, shape index: {}]   ;;  %s567_s3 = inlined_call_operand.vmem [shape: f32[64,64], index: 3, kind: input, shape index: {}]   ;;  %s568_s0 = inlined_call_operand.vmem [shape: f32[8,24], index: 0, kind: input, shape index: {}]   ;;  %s569_s5 = inlined_call_operand.vmem [shape: f32[64,32], index: 5, kind: input, shape index: {}]   ;;  %s570_s2 = inlined_call_operand.vmem [shape: f32[1,64], index: 2, kind: input, shape index: {}]   ;;  %s571_s4 = inlined_call_operand.vmem [shape: f32[1,64], index: 4, kind: input, shape index: {}]   ;;  %s572_s8 = inlined_call_operand.<no memory space> [shape: f32[1,1], index: 8, kind: input, shape index: {}]   ;;  %s573_s6 = inlined_call_operand.vmem [shape: f32[1,32], index: 6, kind: input, shape index: {}]   ;;  %s574_s7 = inlined_call_operand.vmem [shape: f32[1,32], index: 7, kind: input, shape index: {}]   ;;  %s575_s9 = inlined_call_operand.vmem [shape: f32[8,1], index: 9, kind: output, shape index: {}]  }
   0x1   :  { %402 = vmatprep.subr.bf16.mxu0 %v432_v0  ;;  %v35_v1 = vld [vmem:[%s566_s1] sm:$0xff]  ;;  %v36_v2 = vld [vmem:[%s566_s1 + $0x8] sm:$0xff]  ;;  %361 = vmatprep.mubr.msk.f32.mxu0 %vm433_vm0, %v434_v3  ;;  %v122_v8 = vld [vmem:[%s567_s3 + $0x10] sm:$0xff]  ;;  %vm135_vm2 = vcmask 523264   ;;  %v14_v41 = vstv %s572_s8  ;;  %vm307_vm3 = vcmask 261120   ;;  %vm319_vm4 = vcmask 7168  }
   0x2   :  { %v403_v4 = vpack.c.bf16 %v36_v2, %v35_v1  ;;  %405 = vmatprep.subr.bf16.mxu1 %v432_v0  ;;  %v120_v5 = vld [vmem:[%s567_s3] sm:$0xff]  ;;  %v121_v6 = vld [vmem:[%s567_s3 + $0x8] sm:$0xff]  ;;  %380 = vmatprep.mubr.msk.f32.mxu1 %vm433_vm0, %v434_v3  ;;  %v123_v9 = vld [vmem:[%s567_s3 + $0x18] sm:$0xff]  ;;  %15 = vst [vmem:[#allocation2] sm:$0x1] %v14_v41 }
   0x3   :  { %v406_v7 = vpack.c.bf16 %v121_v6, %v120_v5  ;;  %v37_v10 = vld [vmem:[%s566_s1 + $0x10] sm:$0xff]  ;;  %v409_v11 = vpack.c.bf16 %v123_v9, %v122_v8  ;;  %v34_v12 = vld [vmem:[%s568_s0] sm:$0xff]  ;;  %v125_v14 = vld [vmem:[%s567_s3 + $0x28] sm:$0xff] }
   0x4   :  { %404 = vmatpush3.bf16.msra.mxu0 %v403_v4  ;;  %v124_v13 = vld [vmem:[%s567_s3 + $0x20] sm:$0xff]  ;;  %v126_v16 = vld [vmem:[%s567_s3 + $0x30] sm:$0xff]  ;;  %v127_v17 = vld [vmem:[%s567_s3 + $0x38] sm:$0xff] }
   0x5   :  { %359 = vmatprep.subr.mxu0 %v434_v3  ;;  %407 = vmatpush3.bf16.msra.mxu1 %v406_v7  ;;  %v412_v15 = vpack.c.bf16 %v125_v14, %v124_v13  ;;  %v415_v18 = vpack.c.bf16 %v127_v17, %v126_v16  ;;  %v210_v19 = vld [vmem:[%s569_s5] sm:$0xff]  ;;  %v211_v20 = vld [vmem:[%s569_s5 + $0x8] sm:$0xff]  ;;  %v212_v21 = vld [vmem:[%s569_s5 + $0x10] sm:$0xff] }
   0x6   :  { %408 = vmatprep.subr.bf16.mxu1 %v432_v0  ;;  %v418_v22 = vpack.c.bf16 %v211_v20, %v210_v19  ;;  %v213_v23 = vld [vmem:[%s569_s5 + $0x18] sm:$0xff]  ;;  %v214_v25 = vld [vmem:[%s569_s5 + $0x20] sm:$0xff]  ;;  %v215_v26 = vld [vmem:[%s569_s5 + $0x28] sm:$0xff] }
   0x7   :  { %v421_v24 = vpack.c.bf16 %v213_v23, %v212_v21  ;;  %v424_v27 = vpack.c.bf16 %v215_v26, %v214_v25  ;;  %v325_v28 = vld [vmem:[%s570_s2] ss:$0 sm:$0xff]  ;;  %v216_v33 = vld [vmem:[%s569_s5 + $0x30] sm:$0xff]  ;;  %v217_v34 = vld [vmem:[%s569_s5 + $0x38] sm:$0xff] }
   0x8   :  { %360 = vmatpush3.msra.mxu0 %v37_v10  ;;  %v427_v35 = vpack.c.bf16 %v217_v34, %v216_v33  ;;  %v327_v36 = vld [vmem:[%s571_s4] ss:$0 sm:$0xff] }
   0x9   :  { %362 = vmatmul.mubr.msk.f32.vlgmr.msra.gmra.mrb[0].mxu0 %vm45_vm1, %v34_v12  ;;  %410 = vmatpush3.bf16.msra.mxu1 %v409_v11  ;;  %v329_v42 = vld [vmem:[%s573_s6] ss:$0 sm:$0xff] }
   0xa   :  { %411 = vmatprep.subr.bf16.mxu1 %v432_v0  ;;  %417 = vmatprep.subr.bf16.mxu0 %v432_v0  ;;  %v331_v46 = vld [vmem:[%s574_s7] ss:$0 sm:$0xff] }
   0xb   :  { %399 = vmatprep.mubr.msk.f32.mxu0 %vm433_vm0, %v434_v3  ;;  %419 = vmatpush3.bf16.msra.mxu0 %v418_v22  ;;  %v332_v50 = vld [vmem:[#allocation2] ss:$0 sm:$0xff] }
   0xc   :  { %420 = vmatprep.subr.bf16.mxu0 %v432_v0 }
   0xd   :  { %413 = vmatpush3.bf16.msra.mxu1 %v412_v15 }
   0xe   :  { %414 = vmatprep.subr.bf16.mxu1 %v432_v0 }
   0xf   :  { %422 = vmatpush3.bf16.msra.mxu0 %v421_v24 }
  0x10   :  { %423 = vmatprep.subr.bf16.mxu0 %v432_v0 }
  0x11   :  { %416 = vmatpush3.bf16.msra.mxu1 %v415_v18 }
  0x13   :  { %425 = vmatpush3.bf16.msra.mxu0 %v424_v27 }
  0x14   :  { %426 = vmatprep.subr.bf16.mxu0 %v432_v0 }
  0x17   :  { %428 = vmatpush3.bf16.msra.mxu0 %v427_v35 }
  0xdc   :  { %v115_v29 = vpop.f32.mrb[0].mxu0 }
  0xdd   :  { %v116_v30 = vadd.f32 %v325_v28, %v115_v29  ;;  %v363_v31 = vpop.f32.mrb[1].mxu0 }
  0xdf   :  { %v119_v32 = vmax.f32 %v116_v30, 0.0 }
  0xe1   :  { %381 = vmatmul.mubr.msk.f32.vlgmr.msra.gmra.mrb[0].mxu1 %vm135_vm2, %v119_v32 }
 0x1b4   :  { %v205_v37 = vpop.f32.mrb[0].mxu1 }
 0x1b5   :  { %v206_v38 = vadd.f32 %v327_v36, %v205_v37  ;;  %v382_v39 = vpop.f32.mrb[1].mxu1 }
 0x1b7   :  { %v209_v40 = vmax.f32 %v206_v38, 0.0 }
 0x1b9   :  { %400 = vmatmul.mubr.msk.f32.vlgmr.msra.gmra.mrb[2].mxu0 %vm135_vm2, %v209_v40 }
 0x28c   :  { %v294_v43 = vpop.f32.mrb[2].mxu0 }
 0x28d   :  { %v295_v44 = vadd.f32 %v329_v42, %v294_v43  ;;  %v401_v45 = vpop.f32.mrb[3].mxu0 }
 0x28f   :  { %v298_v47 = vmax.f32 %v295_v44, 0.0 }
 0x291   :  { %v306_v48 = vmul.f32 %v331_v46, %v298_v47 }
 0x293   :  { %v308_v49 = vsel %vm307_vm3, %v306_v48, 0.0 }
 0x294   :  { %309 = vadd.xlane.f32.xlu0 %v308_v49 }
 0x321   :  { %v310_v51 = vpop.xlane.xlu0 %309 }
 0x322   :  { %v318_v52 = vadd.f32 %v332_v50, %v310_v51 }
 0x324   :  { %320 = vst.msk [vmem:[%s575_s9] sm:$0xff] %vm319_vm4, %v318_v52 }

</bundles_post_ra>
